<compile_context>
chip_gen: v6e
topology: v6e:2x2x1
jax: 0.10.0
libtpu: 0.0.40
codegen_flags: <defaults>
</compile_context>

<pallas_src>
import numpy as np
import jax
import jax.numpy as jnp
from jax import lax
from jax.experimental import pallas as pl
from jax.experimental.pallas import tpu as pltpu


def _round_up(x, m):
    return (x + m - 1) // m * m


def _embedding_bag_fc_kernel(
    text_ref,    # VMEM [T_pad, 1]      int32  token ids (column)
    starts_ref,  # VMEM [TB, 1]         int32  bag start positions
    lens_ref,    # VMEM [TB, 1]         int32  bag lengths (0 for padded bags)
    emb_ref,     # VMEM [vocab, E]      bf16   embedding table (native width)
    wt_ref,      # VMEM [E, NC_pad]     bf16   pre-transposed fc weight
    b_ref,       # VMEM [1, NC_pad]     f32    fc bias
    out_ref,     # VMEM [TB, NC_pad]    f32
):
    tb = out_ref.shape[0]
    t_pad = text_ref.shape[0]
    vocab = emb_ref.shape[0]

    # --- one-hot token matrix, built on the VPU (no scalar loop) ---
    tok_col = text_ref[...]                                         # (T_pad, 1) i32
    v_iota = lax.broadcasted_iota(jnp.int32, (t_pad, vocab), 1)
    onehot = jnp.where(tok_col == v_iota, 1.0, 0.0).astype(jnp.bfloat16)

    # gathered[t, :] = emb[tok[t], :]  (exact bf16 row copies, MXU matmul)
    gathered = jnp.dot(
        onehot, emb_ref[...], preferred_element_type=jnp.float32
    ).astype(jnp.bfloat16)                                           # (T_pad, E)

    # --- bag membership mask from starts/lens (binary -> exact in bf16) ---
    starts = starts_ref[...]                                         # (TB, 1) i32
    lens = lens_ref[...]                                             # (TB, 1) i32
    t_iota = lax.broadcasted_iota(jnp.int32, (tb, t_pad), 1)
    in_bag = (t_iota >= starts) & (t_iota < starts + lens)
    bag_mask = jnp.where(in_bag, 1.0, 0.0).astype(jnp.bfloat16)      # (TB, T_pad)

    # per-bag sums via MXU, then one f32 row scale (mean); empty bags -> zeros
    sums = jnp.dot(bag_mask, gathered, preferred_element_type=jnp.float32)  # (TB, E)
    inv_len = 1.0 / jnp.maximum(lens, 1).astype(jnp.float32)         # (TB, 1)
    means = sums * inv_len                                           # (TB, E) f32

    # --- Linear: (TB, E) x (E, NC_pad) + bias; lane-dense unmasked store ---
    out_ref[...] = (
        jnp.dot(means, wt_ref[...].astype(jnp.float32),
                preferred_element_type=jnp.float32)
        + b_ref[...]
    )


def prepare_params(emb_table, fc_weight, fc_bias):
    """One-time (model-init) padding / cast / transpose of the static weights."""
    vocab, embed_dim = emb_table.shape
    num_class = fc_weight.shape[0]
    nc_pad = _round_up(num_class, 128)

    emb_bf16 = emb_table.astype(jnp.bfloat16)                        # native (vocab, E)
    wt = jnp.zeros((embed_dim, nc_pad), jnp.bfloat16).at[:, :num_class].set(
        fc_weight.astype(jnp.bfloat16).T)
    bias = jnp.zeros((1, nc_pad), jnp.float32).at[0, :num_class].set(
        fc_bias.astype(jnp.float32))
    return {"emb": emb_bf16, "wt": wt, "bias": bias, "num_class": num_class}


def embedding_bag_net(text, offsets, params, *, bag_block=None):
    """Forward pass of Net: EmbeddingBag(mean) -> Linear."""
    emb, wt, bias = params["emb"], params["wt"], params["bias"]
    num_class = params["num_class"]
    vocab, embed_dim = emb.shape
    nc_pad = wt.shape[1]

    text = text.astype(jnp.int32)
    offsets = offsets.astype(jnp.int32)
    T = text.shape[0]
    B = offsets.shape[0]

    # Per-generation bag block: v5e MXU is 128-wide, v6e/v7x are 256-wide.
    if bag_block is None:
        kind = jax.devices()[0].device_kind.lower()
        bag_block = 128 if "v5" in kind else 256

    # Bag lengths from offsets (last bag runs to end of text — EmbeddingBag contract).
    ends = jnp.concatenate([offsets[1:], jnp.array([T], jnp.int32)])
    lens = ends - offsets

    TB = min(bag_block, _round_up(B, 8))
    B_pad = _round_up(B, TB)
    T_pad = _round_up(T, 8)

    # Small int32 column inputs (VMEM) — no SMEM scalar-prefetch of the token stream.
    text_col = jnp.zeros((T_pad, 1), jnp.int32).at[:T, 0].set(text)
    starts_col = jnp.zeros((B_pad, 1), jnp.int32).at[:B, 0].set(offsets)
    lens_col = jnp.zeros((B_pad, 1), jnp.int32).at[:B, 0].set(lens)  # padded bags: len=0

    # VMEM budget from the actual block footprint (double-buffered), with headroom.
    blk_bytes = (T_pad * 4 + 2 * TB * 4 + vocab * embed_dim * 2
                 + embed_dim * nc_pad * 2 + nc_pad * 4 + TB * nc_pad * 4)
    vmem_limit = int(min(max(2 * blk_bytes + (4 << 20), 16 << 20), 64 << 20))

    grid_spec = pltpu.PrefetchScalarGridSpec(
        num_scalar_prefetch=0,
        grid=(B_pad // TB,),
        in_specs=[
            pl.BlockSpec((T_pad, 1), lambda g: (0, 0)),       # text (full per block)
            pl.BlockSpec((TB, 1), lambda g: (g, 0)),          # starts
            pl.BlockSpec((TB, 1), lambda g: (g, 0)),          # lens
            pl.BlockSpec((vocab, embed_dim), lambda g: (0, 0)),  # emb table (bf16)
            pl.BlockSpec((embed_dim, nc_pad), lambda g: (0, 0)),  # fc weight^T (bf16)
            pl.BlockSpec((1, nc_pad), lambda g: (0, 0)),      # bias
        ],
        out_specs=pl.BlockSpec((TB, nc_pad), lambda g: (g, 0)),
    )

    out = pl.pallas_call(
        _embedding_bag_fc_kernel,
        out_shape=jax.ShapeDtypeStruct((B_pad, nc_pad), jnp.float32),
        grid_spec=grid_spec,
        compiler_params=pltpu.CompilerParams(
            dimension_semantics=("parallel",),
            vmem_limit_bytes=vmem_limit),
    )(text_col, starts_col, lens_col, emb, wt, bias)

    return out[:B, :num_class]


def reference(text, offsets, emb_f32, w_f32, bias):
    """Numpy reference (torch EmbeddingBag(mean) -> Linear semantics), f32 math."""
    T = text.shape[0]
    B = offsets.shape[0]
    ends = np.concatenate([offsets[1:], np.array([T])])
    rows = []
    for b in range(B):
        idx = text[offsets[b]:ends[b]]
        rows.append(emb_f32[idx].mean(axis=0) if len(idx) > 0
                    else np.zeros(emb_f32.shape[1], np.float32))
    means = np.stack(rows).astype(np.float32)
    return means @ w_f32.T + bias


if __name__ == "__main__":
    vocab_size, embed_dim, num_class = 64, 32, 8

    key = jax.random.PRNGKey(0)
    k_emb, k_w, k_text = jax.random.split(key, 3)

    # deterministic init matching Net.init_weights(): uniform(-0.5, 0.5), bias = 0
    initrange = 0.5
    emb_table = jax.random.uniform(
        k_emb, (vocab_size, embed_dim), jnp.float32, -initrange, initrange)
    fc_weight = jax.random.uniform(
        k_w, (num_class, embed_dim), jnp.float32, -initrange, initrange)
    fc_bias = jnp.zeros((num_class,), jnp.float32)

    # example "batch": 4 bags over 12 flat tokens (B not a multiple of TB on purpose)
    text = jax.random.randint(k_text, (12,), 0, vocab_size, jnp.int32)
    offsets = jnp.array([0, 3, 5, 9], jnp.int32)

    params = prepare_params(emb_table, fc_weight, fc_bias)   # hoisted out of per-call path
    out = embedding_bag_net(text, offsets, params)
    out = jax.block_until_ready(out)

    # Reference uses the same bf16-stored weights (upcast to f32) so only the
    # kernel's accumulation-order / rounding differences remain.
    emb_f32 = np.asarray(params["emb"].astype(jnp.float32))
    w_f32 = np.asarray(params["wt"].astype(jnp.float32))[:, :num_class].T  # (NC, E)
    ref = reference(np.asarray(text), np.asarray(offsets),
                    emb_f32, w_f32, np.asarray(fc_bias))

    np.testing.assert_allclose(np.asarray(out), ref, rtol=1e-4, atol=1e-4)
    print("KERNEL_OK")
</pallas_src>

<mosaic_0001>
module attributes {stable_mosaic.version = 11 : i64} {
  func.func @_embedding_bag_fc_kernel(%arg0: i32, %arg1: memref<16x1xi32, #tpu.memory_space<vmem>>, %arg2: memref<8x1xi32, #tpu.memory_space<vmem>>, %arg3: memref<8x1xi32, #tpu.memory_space<vmem>>, %arg4: memref<64x32xbf16, #tpu.memory_space<vmem>>, %arg5: memref<32x128xbf16, #tpu.memory_space<vmem>>, %arg6: memref<1x128xf32, #tpu.memory_space<vmem>>, %arg7: memref<8x128xf32, #tpu.memory_space<vmem>>) attributes {dimension_semantics = [#tpu.dimension_semantics<parallel>], iteration_bounds = array<i64: 1>, scalar_prefetch = 0 : i64, scratch_operands = 0 : i64, tpu.core_type = #tpu.core_type<tc>, window_params = [{pipeline_mode = #tpu.pipeline_mode<synchronous>, transform_indices = @transform_0, window_bounds = array<i64: 16, 1>}, {transform_indices = @transform_1, window_bounds = array<i64: 8, 1>}, {transform_indices = @transform_2, window_bounds = array<i64: 8, 1>}, {pipeline_mode = #tpu.pipeline_mode<synchronous>, transform_indices = @transform_3, window_bounds = array<i64: 64, 32>}, {pipeline_mode = #tpu.pipeline_mode<synchronous>, transform_indices = @transform_4, window_bounds = array<i64: 32, 128>}, {pipeline_mode = #tpu.pipeline_mode<synchronous>, transform_indices = @transform_5, window_bounds = array<i64: 1, 128>}, {transform_indices = @transform_6, window_bounds = array<i64: 8, 128>}]} {
    %c0 = arith.constant 0 : index
    %c0_0 = arith.constant 0 : index
    %0 = vector.load %arg1[%c0, %c0_0] : memref<16x1xi32, #tpu.memory_space<vmem>>, vector<16x1xi32>
    %1 = tpu.iota {dimensions = array<i32: 1>} : vector<16x64xi32>
    %2 = vector.broadcast %0 : vector<16x1xi32> to vector<16x64xi32>
    %3 = arith.cmpi eq, %2, %1 : vector<16x64xi32>
    %cst = arith.constant 1.000000e+00 : f32
    %cst_1 = arith.constant 0.000000e+00 : f32
    %4 = vector.broadcast %cst : f32 to vector<16x64xf32>
    %5 = vector.broadcast %cst_1 : f32 to vector<16x64xf32>
    %6 = arith.select %3, %4, %5 : vector<16x64xi1>, vector<16x64xf32>
    %7 = arith.truncf %6 : vector<16x64xf32> to vector<16x64xbf16>
    %c0_2 = arith.constant 0 : index
    %c0_3 = arith.constant 0 : index
    %8 = vector.load %arg4[%c0_2, %c0_3] : memref<64x32xbf16, #tpu.memory_space<vmem>>, vector<64x32xbf16>
    %cst_4 = arith.constant dense<0.000000e+00> : vector<16x32xf32>
    %9 = tpu.matmul %7, %8, %cst_4 {dimension_numbers = #tpu.dot_dimension_numbers<[1], [0], [0], [1], [0, 0, 1, 1], [], []>} : vector<16x64xbf16>, vector<64x32xbf16>, vector<16x32xf32> -> vector<16x32xf32>
    %10 = arith.truncf %9 : vector<16x32xf32> to vector<16x32xbf16>
    %c0_5 = arith.constant 0 : index
    %c0_6 = arith.constant 0 : index
    %11 = vector.load %arg2[%c0_5, %c0_6] : memref<8x1xi32, #tpu.memory_space<vmem>>, vector<8x1xi32>
    %c0_7 = arith.constant 0 : index
    %c0_8 = arith.constant 0 : index
    %12 = vector.load %arg3[%c0_7, %c0_8] : memref<8x1xi32, #tpu.memory_space<vmem>>, vector<8x1xi32>
    %13 = tpu.iota {dimensions = array<i32: 1>} : vector<8x16xi32>
    %14 = vector.broadcast %11 : vector<8x1xi32> to vector<8x16xi32>
    %15 = arith.cmpi sge, %13, %14 : vector<8x16xi32>
    %16 = arith.addi %11, %12 : vector<8x1xi32>
    %17 = vector.broadcast %16 : vector<8x1xi32> to vector<8x16xi32>
    %18 = arith.cmpi slt, %13, %17 : vector<8x16xi32>
    %19 = arith.andi %15, %18 : vector<8x16xi1>
    %cst_9 = arith.constant 1.000000e+00 : f32
    %cst_10 = arith.constant 0.000000e+00 : f32
    %20 = vector.broadcast %cst_9 : f32 to vector<8x16xf32>
    %21 = vector.broadcast %cst_10 : f32 to vector<8x16xf32>
    %22 = arith.select %19, %20, %21 : vector<8x16xi1>, vector<8x16xf32>
    %23 = arith.truncf %22 : vector<8x16xf32> to vector<8x16xbf16>
    %cst_11 = arith.constant dense<0.000000e+00> : vector<8x32xf32>
    %24 = tpu.matmul %23, %10, %cst_11 {dimension_numbers = #tpu.dot_dimension_numbers<[1], [0], [0], [1], [0, 0, 1, 1], [], []>} : vector<8x16xbf16>, vector<16x32xbf16>, vector<8x32xf32> -> vector<8x32xf32>
    %c1_i32 = arith.constant 1 : i32
    %25 = vector.broadcast %c1_i32 : i32 to vector<8x1xi32>
    %26 = arith.maxsi %12, %25 : vector<8x1xi32>
    %27 = arith.sitofp %26 : vector<8x1xi32> to vector<8x1xf32>
    %cst_12 = arith.constant 1.000000e+00 : f32
    %28 = vector.broadcast %cst_12 : f32 to vector<8x1xf32>
    %29 = arith.divf %28, %27 : vector<8x1xf32>
    %30 = vector.broadcast %29 : vector<8x1xf32> to vector<8x32xf32>
    %31 = arith.mulf %24, %30 : vector<8x32xf32>
    %c0_13 = arith.constant 0 : index
    %c0_14 = arith.constant 0 : index
    %32 = vector.load %arg5[%c0_13, %c0_14] : memref<32x128xbf16, #tpu.memory_space<vmem>>, vector<32x128xbf16>
    %33 = arith.extf %32 : vector<32x128xbf16> to vector<32x128xf32>
    %cst_15 = arith.constant dense<0.000000e+00> : vector<8x128xf32>
    %34 = tpu.matmul %31, %33, %cst_15 {dimension_numbers = #tpu.dot_dimension_numbers<[1], [0], [0], [1], [0, 0, 1, 1], [], []>} : vector<8x32xf32>, vector<32x128xf32>, vector<8x128xf32> -> vector<8x128xf32>
    %c0_16 = arith.constant 0 : index
    %c0_17 = arith.constant 0 : index
    %35 = vector.load %arg6[%c0_16, %c0_17] : memref<1x128xf32, #tpu.memory_space<vmem>>, vector<1x128xf32>
    %36 = vector.broadcast %35 : vector<1x128xf32> to vector<8x128xf32>
    %37 = arith.addf %34, %36 : vector<8x128xf32>
    %c0_18 = arith.constant 0 : index
    %c0_19 = arith.constant 0 : index
    %38 = vector.load %arg7[%c0_18, %c0_19] : memref<8x128xf32, #tpu.memory_space<vmem>>, vector<8x128xf32>
    tpu.vector_store %arg7[%c0_18, %c0_19], %37 {strides = array<i32>} : memref<8x128xf32, #tpu.memory_space<vmem>>, vector<8x128xf32>,
    return
  }
  func.func @transform_0(%arg0: i32) -> (i32, i32) {
    %c0_i32 = arith.constant 0 : i32
    %c0_i32_0 = arith.constant 0 : i32
    %c0_i32_1 = arith.constant 0 : i32
    return %c0_i32, %c0_i32_0 : i32, i32
  }
  func.func @transform_1(%arg0: i32) -> (i32, i32) {
    %c0_i32 = arith.constant 0 : i32
    %c0_i32_0 = arith.constant 0 : i32
    return %arg0, %c0_i32 : i32, i32
  }
  func.func @transform_2(%arg0: i32) -> (i32, i32) {
    %c0_i32 = arith.constant 0 : i32
    %c0_i32_0 = arith.constant 0 : i32
    return %arg0, %c0_i32 : i32, i32
  }
  func.func @transform_3(%arg0: i32) -> (i32, i32) {
    %c0_i32 = arith.constant 0 : i32
    %c0_i32_0 = arith.constant 0 : i32
    %c0_i32_1 = arith.constant 0 : i32
    return %c0_i32, %c0_i32_0 : i32, i32
  }
  func.func @transform_4(%arg0: i32) -> (i32, i32) {
    %c0_i32 = arith.constant 0 : i32
    %c0_i32_0 = arith.constant 0 : i32
    %c0_i32_1 = arith.constant 0 : i32
    return %c0_i32, %c0_i32_0 : i32, i32
  }
  func.func @transform_5(%arg0: i32) -> (i32, i32) {
    %c0_i32 = arith.constant 0 : i32
    %c0_i32_0 = arith.constant 0 : i32
    %c0_i32_1 = arith.constant 0 : i32
    return %c0_i32, %c0_i32_0 : i32, i32
  }
  func.func @transform_6(%arg0: i32) -> (i32, i32) {
    %c0_i32 = arith.constant 0 : i32
    %c0_i32_0 = arith.constant 0 : i32
    return %arg0, %c0_i32 : i32, i32
  }
}

</mosaic_0001>

<bundles_post_ra>
// kernel: tpu_custom_call.1
= control target key start
LH: loop header
LB: loop body
LE: loop exit
PB: predicated region body
PF: predicated region fallthrough
CT: control target
= control target key end

     0   :  { %v383_v2 = vmov 0   ;;  %v384_v3 = vmov 0.0   ;;  %vm385_vm1 = vmmov 0   ;;  %s476_s0 = inlined_call_operand.vmem [shape: s32[16,1], index: 0, kind: input, shape index: {}]   ;;  %s477_s1 = inlined_call_operand.vmem [shape: s32[8,1], index: 1, kind: input, shape index: {}]   ;;  %s478_s2 = inlined_call_operand.vmem [shape: s32[8,1], index: 2, kind: input, shape index: {}]   ;;  %s479_s3 = inlined_call_operand.vmem [shape: bf16[64,32], index: 3, kind: input, shape index: {}]   ;;  %s480_s4 = inlined_call_operand.vmem [shape: bf16[32,128], index: 4, kind: input, shape index: {}]   ;;  %s481_s5 = inlined_call_operand.vmem [shape: f32[1,128], index: 5, kind: input, shape index: {}]   ;;  %s482_s6 = inlined_call_operand.hbm [shape: f32[8,128], index: 6, kind: output, shape index: {}]  }
   0x1   :  { %v25_v0 = vld [vmem:[%s476_s0] sm:$0xff]  ;;  %353 = vset.pattern.permute.xlu0 %v383_v2  ;;  %320 = vmatprep.subr.bf16.mxu0 %v384_v3  ;;  %v355_v4 = vld [vmem:[%s479_s3 + $0x18] sm:$0xff]   ;;  %v26_v5 = vld [vmem:[%s476_s0 + $0x8] sm:$0xff] }
   0x2   :  { %v119_v1 = vld [vmem:[%s478_s2] sm:$0xff]  ;;  %30 = vperm.xlu0 %353, %v25_v0   ;;  %354 = vset.pattern.permute.xlu1 %v383_v2  ;;  %v356_v8 = vld [vmem:[%s479_s3 + $0x10] sm:$0xff]  }
   0x3   :  { %vm176_vm0 = vcmp.gt.s32.totalorder %v119_v1, 1  ;;  %321 = vmatpush3.bf16.msra.mxu0 %v355_v4  ;;  %332 = vmatprep.subr.bf16.mxu1 %v384_v3 }
   0x4   :  { %v177_v6 = vsel %vm176_vm0, %v119_v1, 1  ;;  %322 = vmatprep.subr.bf16.mxu0 %v384_v3  ;;  %328 = vmatprep.mubr.msk.bf16.mxu0 %vm385_vm1, %v384_v3 }
   0x5   :  { %v178_v7 = vcvt.s32.f32 %v177_v6  ;;  %334 = vmatprep.mubr.msk.bf16.mxu1 %vm385_vm1, %v384_v3 }
   0x7   :  { %359 = vrcp.f32 %v178_v7 }
   0x8   :  { %11 = vsyncpa [#allocation3], 0  ;;  %33 = vperm.xlu0 %353, %v26_v5   ;;  %323 = vmatpush3.bf16.msra.mxu0 %v356_v8  ;;  %v357_v9 = vld [vmem:[%s479_s3 + $0x8] sm:$0xff]   ;;  %v358_v10 = vld [vmem:[%s479_s3] sm:$0xff]   ;;  %v27_v14 = vlaneseq  ;;  %vm72_vm4 = vcmask 523264   ;;  %vm132_vm8 = vcmask 130048  }
   0x9   :  { %324 = vmatprep.subr.bf16.mxu0 %v384_v3  ;;  %v118_v11 = vld [vmem:[%s477_s1] sm:$0xff]  ;;  %v307_v26 = vld [vmem:[%s480_s4 + $0x8] sm:$0xff]   ;;  %vm202_vm9 = vcmask 261120   ;;  %s386_s14 = smov [#allocation2]  }
   0xa   :  { %v124_v12 = vadd.s32 %v119_v1, %v118_v11  ;;  %121 = vperm.xlu1 %354, %v118_v11   ;;  %v28_v15 = vand.u32 127, %v27_v14  ;;  %v306_v30 = vunpack.c.h.bf16 %v307_v26  ;;  %v300_v32 = vld [vmem:[%s480_s4] sm:$0xff]   ;;  %v305_v33 = vunpack.c.l.bf16 %v307_v26  ;;  %s283_s15 = sshll.u32 %s386_s14, 4  ;;  %s284_s15 = int_to_ptr.vmem [resolvable:$true] %s283_s15 }
   0xb   :  { %v302_v34 = vunpack.c.h.bf16 %v300_v32  ;;  %v301_v35 = vunpack.c.l.bf16 %v300_v32  ;;  %v297_v42 = vld [vmem:[%s481_s5] ss:$0 sm:$0xff]  ;;  %s361_s16 = scalar_lea.vmem %s284_s15, 128  ;;  %p366_p1 = scmp.lt.s32.totalorder %s284_s15, %s284_s15 }
   0xc   :  { %325 = vmatpush3.bf16.msra.mxu0 %v357_v9  ;;  %p362_p0 = scmp.ne.s32.totalorder %s284_s15, %s361_s16  ;;  %p367_p2 = scmp.lt.s32.totalorder %s361_s16, %s361_s16 }
   0xd   :  { %326 = vmatprep.subr.bf16.mxu0 %v384_v3 }
   0xe   :  { %126 = vperm.xlu1 %354, %v124_v12   ;;  %p368_p3 = por %p367_p2, %p366_p1 }
  0x10   :  { %327 = vmatpush3.bf16.msra.mxu0 %v358_v10  ;;  %p369_p4 = pnand %p368_p3, %p362_p0 }
  0x14   :  { %v360_v13 = vpop.eup %359 }
  0x15   :  { %183 = vperm.xlu0 %353, %v360_v13  }
  0x7d   :  { %v31_v16 = vpop.permute.xlu0 %30 }
  0x7e   :  { %vm35_vm2 = vcmp.eq.s32.totalorder %v31_v16, %v28_v15 }
  0x7f   :  { %v37_v18 = vsel %vm35_vm2, 1.0, %v384_v3 }
  0x83   :  { %v34_v17 = vpop.permute.xlu0 %33 }
  0x84   :  { %vm36_vm3 = vcmp.eq.s32.totalorder %v34_v17, %v28_v15 }
  0x85   :  { %v38_v19 = vsel %vm36_vm3, 1.0, %v384_v3  ;;  %v122_v21 = vpop.permute.xlu1 %121 }
  0x86   :  { %v39_v20 = vpack.c.bf16 %v38_v19, %v37_v18  ;;  %vm123_vm5 = vcmp.ge.s32.totalorder %v28_v15, %v122_v21 }
  0x88   :  { %329 = vmatmul.mubr.msk.bf16.vlgmr.msra.gmra.mxu0 %vm72_vm4, %v39_v20 }
  0x89   :  { %v127_v22 = vpop.permute.xlu1 %126 }
  0x8a   :  { %vm128_vm6 = vcmp.lt.s32.totalorder %v28_v15, %v127_v22 }
  0x8b   :  { %vm129_vm7 = vmand %vm123_vm5, %vm128_vm6 }
  0x8c   :  { %v130_v27 = vsel %vm129_vm7, 1.0, %v384_v3 }
  0x8d   :  { %v131_v31 = vpack.c.bf16 %v130_v27, %v130_v27 }
  0x90   :  { %v184_v36 = vpop.permute.xlu0 %183 }
 0x148   :  { %v110_v23 = vpop.f32.mrf.mxu0 }
 0x14a   :  { %v330_v24 = vpop.f32.mrf.mxu0 }
 0x14c   :  { %v113_v25 = vpop.f32.mrf.mxu0 }
 0x14d   :  { %v117_v28 = vpack.c.bf16 %v113_v25, %v110_v23 }
 0x14e   :  { %v331_v29 = vpop.f32.mrf.mxu0 }
 0x14f   :  { %333 = vmatpush3.bf16.msra.mxu1 %v117_v28 }
 0x150   :  { %338 = vmatprep.subr.mxu1 %v384_v3 }
 0x152   :  { %335 = vmatmul.mubr.msk.bf16.vlgmr.msra.gmra.mxu1 %vm132_vm8, %v131_v31 }
 0x153   :  { %339 = vmatpush3.msra.mxu1 %v306_v30  ;;  %346 = vmatprep.mubr.msk.f32.mxu1 %vm385_vm1, %v384_v3 }
 0x154   :  { %340 = vmatprep.subr.mxu1 %v384_v3 }
 0x155   :  { %341 = vmatpush3.msra.mxu1 %v305_v33 }
 0x156   :  { %342 = vmatprep.subr.mxu1 %v384_v3 }
 0x157   :  { %343 = vmatpush3.msra.mxu1 %v302_v34 }
 0x158   :  { %344 = vmatprep.subr.mxu1 %v384_v3 }
 0x159   :  { %345 = vmatpush3.msra.mxu1 %v301_v35 }
 0x212   :  { %v170_v37 = vpop.f32.mrf.mxu1 }
 0x213   :  { %v186_v38 = vmul.f32 %v184_v36, %v170_v37 }
 0x214   :  { %v336_v39 = vpop.f32.mrf.mxu1 }
 0x215   :  { %347 = vmatmul.mubr.msk.f32.vlgmr.msra.gmra.mxu1 %vm202_vm9, %v186_v38 }
 0x216   :  { %v173_v40 = vpop.f32.mrf.mxu1 }
 0x218   :  { %v337_v41 = vpop.f32.mrf.mxu1 }
 0x2d5   :  { %v272_v43 = vpop.f32.mrf.mxu1 }
 0x2d6   :  { %v273_v44 = vadd.f32 %v297_v42, %v272_v43 }
 0x2d7   :  { %v348_v45 = vpop.f32.mrf.mxu1 }
 0x2d8   :  { %276 = vst [vmem:[#allocation2] sm:$0xff] %v273_v44 }
 0x2d9   :  { %372 = shalt.err (!%p369_p4)
}
 0x2da   :  { %286 = dma.vmem_to_hbm [thread:$0]  %s284_s15, 128, %s482_s6, [#allocation3]  }
 0x2db   :  { %381 = dma.done.wait [#allocation3], 128  }
 0x2dc   :  { %382 = vsyncadd [#allocation3], 4294967168 }
 0x2dd   :  { %290 = vsyncpa [#allocation3], 1 }

</bundles_post_ra>
